<compile_context>
chip_gen: v5e
topology: v5e:2x2
jax: 0.10.0
libtpu: 0.0.40
codegen_flags: <defaults>
</compile_context>

<pallas_src>
import math

import jax
import jax.numpy as jnp
from jax.experimental import pallas as pl
from jax.experimental.pallas import tpu as pltpu


_MAX_BLOCK_BYTES = 2 << 20       # ~2 MiB padded block -> in+out double-buffered ~8 MiB
_MIN_BLOCK_BYTES = 256 << 10     # keep blocks well above the ~0.35 us/step overhead
_TINY_BYTES = 1 << 20            # below this, pallas_call fixed overhead dominates
_VMEM_LIMIT_BYTES = 32 * 1024 * 1024  # explicit; safe on v5e/v6e (128 MiB) and v7x (64 MiB)
_TARGET_STEPS = 8                # enough steps for both v7x cores to pipeline


def _resolve_shape(shape, total):
    """torch.Tensor.view-style shape resolution (supports a single -1)."""
    shape = list(shape)
    if -1 in shape:
        i = shape.index(-1)
        known = math.prod(s for s in shape if s != -1)
        shape[i] = total // known
    if math.prod(shape) != total:
        raise ValueError(f"cannot view {total} elements as {tuple(shape)}")
    return tuple(shape)


def _copy_kernel(x_ref, o_ref):
    # Pure lane-dense copy of one contiguous row slab.
    o_ref[...] = x_ref[...]


def _sublane_rows(itemsize):
    """Sublane-tile row count for this dtype (8 f32 / 16 bf16 / 32 int8)."""
    return 8 * max(1, 4 // itemsize)


def _factor_flat(total, itemsize, lane_cap_bytes):
    """Factor flat length into (R, W): W a multiple of 128 that divides total.

    Any (R, W) re-factoring of the flat stream keeps row slabs contiguous in
    HBM (single-descriptor DMAs); W only needs to be lane-dense and small
    enough that one sublane-aligned row group stays within the block budget.
    Requires total % 128 == 0.
    """
    m = total // 128
    gmax = max(1, lane_cap_bytes // (128 * itemsize))
    g = 1
    for d in range(min(m, gmax), 0, -1):
        if m % d == 0:
            g = d
            break
    w = 128 * g
    return total // w, w


def _rows_per_block(rows, width, itemsize, *,
                    max_block_bytes=_MAX_BLOCK_BYTES,
                    min_block_bytes=_MIN_BLOCK_BYTES,
                    target_steps=_TARGET_STEPS):
    """Rows per block for the (rows, width) slab.

    The block's second-to-last dim must be a multiple of the sublane tile or
    equal the full dim; because blocks are sublane-aligned, padded VMEM bytes
    equal nominal bytes, so the cap below is the real per-buffer VMEM cost.
    """
    sub = _sublane_rows(itemsize)
    if rows <= sub:
        return rows                      # full-dim block (tiny sublane pad only)
    row_bytes = width * itemsize
    rb = max(sub, (max_block_bytes // (sub * row_bytes)) * sub)
    if rb >= rows:
        return rows
    # Prefer >= target_steps grid steps (keeps both v7x cores busy and the
    # per-core DMA pipeline full) while blocks stay >= min_block_bytes.
    while -(-rows // rb) < target_steps:
        nrb = ((rb // 2) // sub) * sub
        if nrb < sub or nrb * row_bytes < min_block_bytes:
            break
        rb = nrb
    return rb


def reshape_forward(x, shape, *, force_kernel=False):
    """Pallas equivalent of `x.view(x.size(0), *shape)` (row-major)."""
    n = x.shape[0]
    k = math.prod(x.shape[1:])
    out_tail = _resolve_shape(shape, k)
    out_shape = (n,) + out_tail
    total = n * k
    itemsize = jnp.dtype(x.dtype).itemsize

    # Tiny inputs: the view is pure metadata; the kernel would be pure overhead.
    if total == 0 or (not force_kernel and total * itemsize < _TINY_BYTES):
        return x.reshape(out_shape)

    if total % 128 == 0:
        # Row-slab tiling of a lane-dense (R, W) re-factoring of the flat stream.
        sub = _sublane_rows(itemsize)
        slab_rows, slab_width = _factor_flat(total, itemsize,
                                             _MAX_BLOCK_BYTES // sub)
        rb = _rows_per_block(slab_rows, slab_width, itemsize)
        x2 = x.reshape(slab_rows, slab_width)
        slab = (slab_rows, slab_width)
        block = (rb, slab_width)
        grid = (pl.cdiv(slab_rows, rb),)
        index_map = lambda i: (i, 0)
    else:
        # Non-128-divisible total: single logical row, lane-tiled with a
        # (masked) ragged tail.  Never stages the whole array unless tiny.
        x2 = x.reshape(1, total)
        slab = (1, total)
        bw = max(128, (_MAX_BLOCK_BYTES // (8 * itemsize)) // 128 * 128)
        if bw >= total:
            block = (1, total)           # full-array block (tiny odd shapes only)
            grid = (1,)
        else:
            block = (1, bw)
            grid = (pl.cdiv(total, bw),)
        index_map = lambda i: (0, i)

    out_flat = pl.pallas_call(
        _copy_kernel,
        out_shape=jax.ShapeDtypeStruct(slab, x.dtype),
        grid=grid,
        in_specs=[pl.BlockSpec(block, index_map)],
        out_specs=pl.BlockSpec(block, index_map),
        compiler_params=pltpu.CompilerParams(
            dimension_semantics=("parallel",),
            vmem_limit_bytes=_VMEM_LIMIT_BYTES,
        ),
        cost_estimate=pl.CostEstimate(
            flops=0,
            transcendentals=0,
            bytes_accessed=2 * total * itemsize,  # read + write every element
        ),
    )(x2)

    # Metadata-only expansion back to the requested view shape.
    return out_flat.reshape(out_shape)


if __name__ == "__main__":
    key = jax.random.PRNGKey(0)
    # (N, C, H, W) = (2, 4, 16, 16)  ->  view as (N, 16, 64).
    x = jax.random.normal(key, (2, 4, 16, 16), dtype=jnp.float32)

    out = jax.block_until_ready(reshape_forward(x, (16, 64), force_kernel=True))
    ref = x.reshape(2, 16, 64)
    assert out.shape == (2, 16, 64), out.shape
    assert out.dtype == x.dtype
    assert jnp.array_equal(out, ref), "Pallas reshape mismatch vs reference"

    # Flatten case (Reshape(-1)), also through the kernel.
    out_flat = jax.block_until_ready(reshape_forward(x, (-1,), force_kernel=True))
    assert out_flat.shape == (2, 1024)
    assert jnp.array_equal(out_flat, x.reshape(2, 1024))

    # Non-128-divisible total exercises the lane-tiled fallback path.
    x_odd = jax.random.normal(jax.random.PRNGKey(1), (2, 3, 5, 7), dtype=jnp.float32)
    out_odd = jax.block_until_ready(reshape_forward(x_odd, (-1,), force_kernel=True))
    assert out_odd.shape == (2, 105)
    assert jnp.array_equal(out_odd, x_odd.reshape(2, 105))

    # Larger (4 MiB) input: multi-step row-slab grid through the kernel.
    x_big = jax.random.normal(jax.random.PRNGKey(2), (64, 4, 64, 64), dtype=jnp.float32)
    out_big = jax.block_until_ready(reshape_forward(x_big, (4 * 64 * 64,)))
    assert out_big.shape == (64, 4 * 64 * 64)
    assert jnp.array_equal(out_big, x_big.reshape(64, 4 * 64 * 64))

    # Tiny-input bypass path (metadata-only view, no kernel).
    out_bypass = jax.block_until_ready(reshape_forward(x, (16, 64)))
    assert jnp.array_equal(out_bypass, ref)

    print("KERNEL_OK")
</pallas_src>

<mosaic_0001>
module attributes {stable_mosaic.version = 11 : i64} {
  func.func @_copy_kernel(%arg0: i32, %arg1: memref<1x2048xf32, #tpu.memory_space<vmem>>, %arg2: memref<1x2048xf32, #tpu.memory_space<vmem>>) attributes {dimension_semantics = [#tpu.dimension_semantics<parallel>], iteration_bounds = array<i64: 1>, scalar_prefetch = 0 : i64, scratch_operands = 0 : i64, tpu.core_type = #tpu.core_type<tc>, window_params = [{transform_indices = @transform_0, window_bounds = array<i64: 1, 2048>}, {transform_indices = @transform_1, window_bounds = array<i64: 1, 2048>}]} {
    %c0 = arith.constant 0 : index
    %c0_0 = arith.constant 0 : index
    %0 = vector.load %arg1[%c0, %c0_0] : memref<1x2048xf32, #tpu.memory_space<vmem>>, vector<1x2048xf32>
    %c0_1 = arith.constant 0 : index
    %c0_2 = arith.constant 0 : index
    %1 = vector.load %arg2[%c0_1, %c0_2] : memref<1x2048xf32, #tpu.memory_space<vmem>>, vector<1x2048xf32>
    tpu.vector_store %arg2[%c0_1, %c0_2], %0 {strides = array<i32>} : memref<1x2048xf32, #tpu.memory_space<vmem>>, vector<1x2048xf32>,
    return
  }
  func.func @transform_0(%arg0: i32) -> (i32, i32) {
    %c0_i32 = arith.constant 0 : i32
    %c0_i32_0 = arith.constant 0 : i32
    return %arg0, %c0_i32 : i32, i32
  }
  func.func @transform_1(%arg0: i32) -> (i32, i32) {
    %c0_i32 = arith.constant 0 : i32
    %c0_i32_0 = arith.constant 0 : i32
    return %arg0, %c0_i32 : i32, i32
  }
}

</mosaic_0001>

<bundles_post_ra>
// kernel: tpu_custom_call.1
= control target key start
LH: loop header
LB: loop body
LE: loop exit
PB: predicated region body
PF: predicated region fallthrough
CT: control target
= control target key end

     0   :  { %6 = vsyncpa [#allocation3], 0  ;;  %s116_s0 = inlined_call_operand.hbm [shape: f32[1,2048], index: 0, kind: input, shape index: {}]   ;;  %s117_s1 = inlined_call_operand.hbm [shape: f32[1,2048], index: 1, kind: output, shape index: {}]  }
   0x1   :  { %7 = vsyncpa [#allocation4], 0  ;;  %s13_s8 = sshll.u32 %s116_s0, 4  ;;  %s98_s9 = smov [#allocation2]   ;;  %s14_s8 = int_to_ptr.hbm [resolvable:$true] %s13_s8 }
   0x2   :  { %s15_s10 = sshll.u32 %s98_s9, 4  ;;  %s16_s10 = int_to_ptr.vmem [resolvable:$true] %s15_s10 }
   0x3   :  { %18 = dma.hbm_to_vmem [thread:$0]  %s14_s8, 256, %s16_s10, [#allocation3]  }
   0x4   :  { %94 = dma.done.wait [#allocation3], 256  }
   0x5   :  { %95 = vsyncadd [#allocation3], 4294967040  ;;  %s99_s11 = smov [#allocation5]   ;;  %s34_s15 = sshll.u32 %s117_s1, 4  ;;  %v23_v0 = vld [vmem:[#allocation2] sm:$0xff]  ;;  %v24_v1 = vld [vmem:[#allocation2 + $0x8] sm:$0xff]  ;;  %s35_s15 = int_to_ptr.hbm [resolvable:$true] %s34_s15 }
   0x6   :  { %s32_s12 = sshll.u32 %s99_s11, 4  ;;  %25 = vst [vmem:[#allocation5] sm:$0xff] %v23_v0  ;;  %s33_s12 = int_to_ptr.vmem [resolvable:$true] %s32_s12 }
   0x7   :  { %26 = vst [vmem:[#allocation5 + $0x8] sm:$0xff] %v24_v1 }
   0x8   :  { %37 = dma.vmem_to_hbm [thread:$0]  %s33_s12, 256, %s35_s15, [#allocation4]  }
   0x9   :  { %96 = dma.done.wait [#allocation4], 256  }
   0xa   :  { %97 = vsyncadd [#allocation4], 4294967040 }
   0xb   :  { %42 = vsyncpa [#allocation3], 1 }
   0xc   :  { %43 = vsyncpa [#allocation4], 1 }

</bundles_post_ra>
